<compile_context>
chip_gen: v6e
topology: v6e:2x2x1
jax: 0.10.0
libtpu: 0.0.40
codegen_flags: <defaults>
</compile_context>

<pallas_src>
import functools
import math

import jax
import jax.numpy as jnp
from jax.experimental import pallas as pl
from jax.experimental.pallas import tpu as pltpu


# ----------------------------------------------------------------------------
# Dense projection: row-tiled linear kernel
# ----------------------------------------------------------------------------
def linear_kernel(x_ref, w_ref, b_ref, o_ref):
    # x: (tm, Din), w: (Din, Dout), b: (1, Dout)
    o_ref[...] = (
        jnp.dot(x_ref[...], w_ref[...], preferred_element_type=jnp.float32)
        + b_ref[...]
    )


def pallas_linear(x2d, w, b2d, tile_m=256):
    """x2d: (N, Din) @ w: (Din, Dout) + b.  Row-tiled so production-scale N
    stays within v7x's 64 MiB VMEM with double buffering; tiny N uses tm=N."""
    n, din = x2d.shape
    dout = w.shape[1]
    tm = min(tile_m, n)
    grid_m = pl.cdiv(n, tm)
    return pl.pallas_call(
        linear_kernel,
        out_shape=jax.ShapeDtypeStruct((n, dout), jnp.float32),
        grid=(grid_m,),
        in_specs=[
            pl.BlockSpec((tm, din), lambda i: (i, 0)),
            pl.BlockSpec((din, dout), lambda i: (0, 0)),
            pl.BlockSpec((1, dout), lambda i: (0, 0)),
        ],
        out_specs=pl.BlockSpec((tm, dout), lambda i: (i, 0)),
        compiler_params=pltpu.CompilerParams(
            dimension_semantics=("parallel",),
            vmem_limit_bytes=32 * 1024 * 1024),
    )(x2d, w, b2d)


# ----------------------------------------------------------------------------
# FeatureEncoder: 4 x (LayerNorm -> depthwise conv(1,K) -> pointwise 1x1 ->
# residual), all fused into a single kernel per encoder.
# ----------------------------------------------------------------------------
def enc_stack_kernel(x_ref, gamma_ref, beta_ref, dww_ref, dwb_ref,
                     pww_ref, pwb_ref, o_ref, *, kernel_size, num_layers):
    # x_ref: (1, L, D) block for one batch element.  Weights are stacked over
    # layers: gamma/beta/dw_b/pw_b: (NL, D), dw_w: (NL, K, D), pw_w: (NL, D, D)
    x = x_ref[0]                                      # (L, D)
    L, D = x.shape
    half = (kernel_size - 1) // 2
    row = jax.lax.broadcasted_iota(jnp.int32, (L, D), 0)

    gamma = gamma_ref[...]
    beta = beta_ref[...]
    dww = dww_ref[...]
    dwb = dwb_ref[...]
    pww = pww_ref[...]
    pwb = pwb_ref[...]

    out = x
    for layer in range(num_layers):                   # static unroll (4)
        residual = out

        # LayerNorm over channels (eps=1e-6, biased variance like PyTorch)
        mean = jnp.mean(out, axis=-1, keepdims=True)
        var = jnp.mean(jnp.square(out - mean), axis=-1, keepdims=True)
        xn = (out - mean) * jax.lax.rsqrt(var + 1e-6)
        xn = xn * gamma[layer:layer + 1, :] + beta[layer:layer + 1, :]

        # Depthwise conv along the sequence, zero padding 'same'.
        dww_l = dww[layer]                            # (K, D)
        conv = jnp.zeros((L, D), jnp.float32)
        for k in range(kernel_size):
            off = k - half                            # tap offset
            # shifted[l] = xn[l + off]  (circular roll, masked to zero-pad)
            shifted = xn if off == 0 else pltpu.roll(xn, shift=(-off) % L, axis=0)
            valid = (row + off >= 0) & (row + off < L)
            conv = conv + jnp.where(valid, shifted, 0.0) * dww_l[k:k + 1, :]
        conv = conv + dwb[layer:layer + 1, :]

        # Pointwise 1x1 conv == matmul over channels, then residual add.
        out = (jnp.dot(conv, pww[layer], preferred_element_type=jnp.float32)
               + pwb[layer:layer + 1, :] + residual)

    o_ref[0] = out


def feature_encoder(x, p, kernel_size=7):
    """FeatureEncoder forward. x: (B, L, D); p: dict of stacked layer weights."""
    B, L, D = x.shape
    NL = p["gamma"].shape[0]
    K = kernel_size
    kern = functools.partial(enc_stack_kernel, kernel_size=K, num_layers=NL)
    return pl.pallas_call(
        kern,
        out_shape=jax.ShapeDtypeStruct((B, L, D), jnp.float32),
        grid=(B,),
        in_specs=[
            pl.BlockSpec((1, L, D), lambda b: (b, 0, 0)),
            pl.BlockSpec((NL, D), lambda b: (0, 0)),
            pl.BlockSpec((NL, D), lambda b: (0, 0)),
            pl.BlockSpec((NL, K, D), lambda b: (0, 0, 0)),
            pl.BlockSpec((NL, D), lambda b: (0, 0)),
            pl.BlockSpec((NL, D, D), lambda b: (0, 0, 0)),
            pl.BlockSpec((NL, D), lambda b: (0, 0)),
        ],
        out_specs=pl.BlockSpec((1, L, D), lambda b: (b, 0, 0)),
        compiler_params=pltpu.CompilerParams(
            dimension_semantics=("parallel",),
            vmem_limit_bytes=32 * 1024 * 1024),
    )(x, p["gamma"], p["beta"], p["dw_w"], p["dw_b"], p["pw_w"], p["pw_b"])


# ----------------------------------------------------------------------------
# Fused: text max-pool fusion + both predictor heads + vmask masking.
# ----------------------------------------------------------------------------
def fuse_pred_kernel(t_ref, v_ref, sc_ref, w_ref, b_ref, vm_ref,
                     s_ref, e_ref):
    # t: (B, Lt, D), v: (B, Lv, D), sc: SMEM (1,1), w: (2, D), b: SMEM (2,),
    # vm: (B, Lv, 1).  Outputs: s/e logits (B, Lv, 1).
    scale = sc_ref[0, 0]
    t = t_ref[...] * scale                             # scalar tmask[1,1] bcast
    f_t = jnp.max(t, axis=1, keepdims=True)            # (B, 1, D)
    f = v_ref[...] * f_t                               # (B, Lv, D) fused feat

    w = w_ref[...]                                     # (2, D)
    s_raw = jnp.sum(f * w[0:1, :], axis=-1, keepdims=True) + b_ref[0]  # (B,Lv,1)
    e_raw = jnp.sum(f * w[1:2, :], axis=-1, keepdims=True) + b_ref[1]

    vm = vm_ref[...]                                   # (B, Lv, 1)
    neg = jnp.float32(-1e4)   # smaller sentinel: avoids inf/NaN in the 2D outer
    s_ref[...] = s_raw * vm + (1.0 - vm) * neg
    e_ref[...] = e_raw * vm + (1.0 - vm) * neg


def fuse_and_predict(tfeat, vfeat, tscale11, pred_w, pred_b, vmask3):
    B, Lt, D = tfeat.shape
    _, Lv, _ = vfeat.shape
    return pl.pallas_call(
        fuse_pred_kernel,
        out_shape=(jax.ShapeDtypeStruct((B, Lv, 1), jnp.float32),
                   jax.ShapeDtypeStruct((B, Lv, 1), jnp.float32)),
        in_specs=[
            pl.BlockSpec(memory_space=pltpu.MemorySpace.VMEM),   # tfeat
            pl.BlockSpec(memory_space=pltpu.MemorySpace.VMEM),   # vfeat
            pl.BlockSpec(memory_space=pltpu.MemorySpace.SMEM),   # tmask[1,1]
            pl.BlockSpec(memory_space=pltpu.MemorySpace.VMEM),   # pred_w (2,D)
            pl.BlockSpec(memory_space=pltpu.MemorySpace.SMEM),   # pred_b (2,)
            pl.BlockSpec(memory_space=pltpu.MemorySpace.VMEM),   # vmask (B,Lv,1)
        ],
    )(tfeat, vfeat, tscale11, pred_w, pred_b, vmask3)


# ----------------------------------------------------------------------------
# 2D logits: outer(slogits, elogits) * label2d_mask
# ----------------------------------------------------------------------------
def outer2d_kernel(s_ref, e_ref, m_ref, o_ref):
    # s: (B, Lv, 1), e: (B, 1, Lv), m: (1, Lv, Lv)
    o_ref[...] = s_ref[...] * e_ref[...] * m_ref[...]


def outer2d(s3, e3, m3):
    B, Lv, _ = s3.shape
    return pl.pallas_call(
        outer2d_kernel,
        out_shape=jax.ShapeDtypeStruct((B, Lv, Lv), jnp.float32),
    )(s3, e3, m3)


# ----------------------------------------------------------------------------
# Parameter construction (deterministic, synthetic)
# ----------------------------------------------------------------------------
def init_encoder_params(key, D, kernel_size=7, num_layers=4):
    key, k1, k2, k3, k4 = jax.random.split(key, 5)
    params = dict(
        gamma=jnp.ones((num_layers, D), jnp.float32),
        beta=jnp.zeros((num_layers, D), jnp.float32),
        # depthwise weight stored as (NL, K, D): dw_w[l, k, c] == torch w[c,0,0,k]
        dw_w=0.1 * jax.random.normal(k1, (num_layers, kernel_size, D), jnp.float32),
        dw_b=0.01 * jax.random.normal(k2, (num_layers, D), jnp.float32),
        # pointwise weight stored as (NL, Din, Dout) (torch weight transposed)
        pw_w=(1.0 / math.sqrt(D)) * jax.random.normal(
            k3, (num_layers, D, D), jnp.float32),
        pw_b=0.01 * jax.random.normal(k4, (num_layers, D), jnp.float32),
    )
    return key, params


def init_params(key, cfg):
    D = cfg["dim"]
    params = {}
    key, k1, k2, k3, k4, k5 = jax.random.split(key, 6)
    # word / char embedding tables + projection to D
    params["word_table"] = 0.1 * jax.random.normal(
        k1, (cfg["num_words"], cfg["word_dim"]), jnp.float32)
    params["char_table"] = 0.1 * jax.random.normal(
        k2, (cfg["num_chars"], cfg["char_dim"]), jnp.float32)
    emb_in = cfg["word_dim"] + cfg["char_dim"]
    params["emb_proj_w"] = (1.0 / math.sqrt(emb_in)) * jax.random.normal(
        k3, (emb_in, D), jnp.float32)
    params["emb_proj_b"] = jnp.zeros((1, D), jnp.float32)
    # visual projection vdim -> D
    params["vis_w"] = (1.0 / math.sqrt(cfg["vdim"])) * jax.random.normal(
        k4, (cfg["vdim"], D), jnp.float32)
    params["vis_b"] = jnp.zeros((1, D), jnp.float32)
    # predictor heads: row 0 = start head, row 1 = end head
    params["pred_w"] = (1.0 / math.sqrt(D)) * jax.random.normal(
        k5, (2, D), jnp.float32)
    params["pred_b"] = jnp.zeros((2,), jnp.float32)
    # encoders (stacked layer weights)
    key, params["text_encoder"] = init_encoder_params(key, D)
    key, params["video_encoder"] = init_encoder_params(key, D)
    # 2D label mask (valid spans: end >= start)
    # TODO(synk): generate_2dmask definition not provided; using upper-triangular mask.
    params["label2d_mask"] = jnp.triu(
        jnp.ones((cfg["vlen"], cfg["vlen"]), jnp.float32))
    return params


# ----------------------------------------------------------------------------
# BaseFast forward
# ----------------------------------------------------------------------------
def base_fast_forward(params, cfg, word_ids, char_ids, vfeat_in, vmask, tmask):
    B, Lv, _ = vfeat_in.shape
    _, Lt = word_ids.shape
    D = cfg["dim"]

    # --- video_affine ---------------------------------------------------------
    # TODO(synk): VisualProjection definition not provided; implemented as a linear projection.
    vfeat = pallas_linear(
        vfeat_in.reshape(B * Lv, cfg["vdim"]), params["vis_w"], params["vis_b"]
    ).reshape(B, Lv, D)

    # --- wordchat_emb (word + char embedding) ---------------------------------
    # TODO(synk): Embedding module (word+char CNN) not provided; approximated as
    #             lookup + char max-pool + linear projection to D.
    w_emb = jnp.take(params["word_table"], word_ids, axis=0)        # (B,Lt,Wd)
    c_emb = jnp.take(params["char_table"], char_ids, axis=0)        # (B,Lt,Lc,Cd)
    c_feat = jnp.max(c_emb, axis=2)                                 # (B,Lt,Cd)
    cat = jnp.concatenate([w_emb, c_feat], axis=-1)
    emb_in = cfg["word_dim"] + cfg["char_dim"]
    tfeat = pallas_linear(
        cat.reshape(B * Lt, emb_in), params["emb_proj_w"], params["emb_proj_b"]
    ).reshape(B, Lt, D)

    # --- feature encoders: one fused 4-layer kernel each ----------------------
    tfeat = feature_encoder(tfeat, params["text_encoder"], kernel_size=7)
    vfeat = feature_encoder(vfeat, params["video_encoder"], kernel_size=7)

    # --- fusion + predictor heads (single fused kernel) ------------------------
    # (reproduces the original `tmask[1, 1, None]` scalar broadcast exactly)
    # TODO(synk): SeqPANPredictor definition not provided; approximated as two
    #             masked linear heads over the fused features.
    tscale11 = tmask[1, 1].reshape(1, 1).astype(jnp.float32)
    vmask3 = vmask.astype(jnp.float32)[:, :, None]                  # (B,Lv,1)
    s3, e3 = fuse_and_predict(tfeat, vfeat, tscale11,
                              params["pred_w"], params["pred_b"], vmask3)
    slogits = jnp.squeeze(s3, axis=-1)                              # (B,Lv)
    elogits = jnp.squeeze(e3, axis=-1)                              # (B,Lv)

    # --- 2D logits: outer(slogits, elogits) * label2d_mask ---------------------
    logit2ds = outer2d(s3, elogits[:, None, :], params["label2d_mask"][None])

    return {
        "tfeat": tfeat,
        "vfeat": vfeat,
        "slogits": slogits,
        "elogits": elogits,
        "vmask": vmask,
        "label2d_mask": params["label2d_mask"],
        "logit2ds": logit2ds,
    }


# ----------------------------------------------------------------------------
# Main
# ----------------------------------------------------------------------------
if __name__ == "__main__":
    cfg = dict(
        dim=32,        # D
        word_dim=32,
        char_dim=8,
        vdim=64,
        vlen=16,       # Lv (video length)
        num_words=100,
        num_chars=20,
        droprate=0.0,
    )
    B, Lt, Lc, Lv = 2, 8, 5, cfg["vlen"]

    key = jax.random.PRNGKey(0)
    params = init_params(key, cfg)

    key, kw, kc, kv = jax.random.split(jax.random.PRNGKey(0), 4)
    word_ids = jax.random.randint(kw, (B, Lt), 0, cfg["num_words"], jnp.int32)
    char_ids = jax.random.randint(kc, (B, Lt, Lc), 0, cfg["num_chars"], jnp.int32)
    vfeat_in = jax.random.normal(kv, (B, Lv, cfg["vdim"]), jnp.float32)

    # masks: batch 0 full length, batch 1 shorter
    vmask = jnp.stack([
        jnp.ones((Lv,), jnp.float32),
        jnp.concatenate([jnp.ones((12,), jnp.float32), jnp.zeros((4,), jnp.float32)]),
    ])
    tmask = jnp.stack([
        jnp.ones((Lt,), jnp.float32),
        jnp.concatenate([jnp.ones((6,), jnp.float32), jnp.zeros((2,), jnp.float32)]),
    ])

    res = base_fast_forward(params, cfg, word_ids, char_ids, vfeat_in, vmask, tmask)
    jax.block_until_ready(res)

    assert res["tfeat"].shape == (B, Lt, cfg["dim"])
    assert res["vfeat"].shape == (B, Lv, cfg["dim"])
    assert res["slogits"].shape == (B, Lv)
    assert res["elogits"].shape == (B, Lv)
    assert res["logit2ds"].shape == (B, Lv, Lv)
    assert bool(jnp.all(jnp.isfinite(res["logit2ds"])))
    print("KERNEL_OK")
</pallas_src>

<mosaic_0001>
module attributes {stable_mosaic.version = 11 : i64} {
  func.func @linear_kernel(%arg0: i32, %arg1: memref<32x64xf32, #tpu.memory_space<vmem>>, %arg2: memref<64x32xf32, #tpu.memory_space<vmem>>, %arg3: memref<1x32xf32, #tpu.memory_space<vmem>>, %arg4: memref<32x32xf32, #tpu.memory_space<vmem>>) attributes {dimension_semantics = [#tpu.dimension_semantics<parallel>], iteration_bounds = array<i64: 1>, scalar_prefetch = 0 : i64, scratch_operands = 0 : i64, tpu.core_type = #tpu.core_type<tc>, window_params = [{transform_indices = @transform_0, window_bounds = array<i64: 32, 64>}, {pipeline_mode = #tpu.pipeline_mode<synchronous>, transform_indices = @transform_1, window_bounds = array<i64: 64, 32>}, {pipeline_mode = #tpu.pipeline_mode<synchronous>, transform_indices = @transform_2, window_bounds = array<i64: 1, 32>}, {transform_indices = @transform_3, window_bounds = array<i64: 32, 32>}]} {
    %c0 = arith.constant 0 : index
    %c0_0 = arith.constant 0 : index
    %0 = vector.load %arg1[%c0, %c0_0] : memref<32x64xf32, #tpu.memory_space<vmem>>, vector<32x64xf32>
    %c0_1 = arith.constant 0 : index
    %c0_2 = arith.constant 0 : index
    %1 = vector.load %arg2[%c0_1, %c0_2] : memref<64x32xf32, #tpu.memory_space<vmem>>, vector<64x32xf32>
    %cst = arith.constant dense<0.000000e+00> : vector<32x32xf32>
    %2 = tpu.matmul %0, %1, %cst {dimension_numbers = #tpu.dot_dimension_numbers<[1], [0], [0], [1], [0, 0, 1, 1], [], []>} : vector<32x64xf32>, vector<64x32xf32>, vector<32x32xf32> -> vector<32x32xf32>
    %c0_3 = arith.constant 0 : index
    %c0_4 = arith.constant 0 : index
    %3 = vector.load %arg3[%c0_3, %c0_4] : memref<1x32xf32, #tpu.memory_space<vmem>>, vector<1x32xf32>
    %4 = vector.broadcast %3 : vector<1x32xf32> to vector<32x32xf32>
    %5 = arith.addf %2, %4 : vector<32x32xf32>
    %c0_5 = arith.constant 0 : index
    %c0_6 = arith.constant 0 : index
    %6 = vector.load %arg4[%c0_5, %c0_6] : memref<32x32xf32, #tpu.memory_space<vmem>>, vector<32x32xf32>
    tpu.vector_store %arg4[%c0_5, %c0_6], %5 {strides = array<i32>} : memref<32x32xf32, #tpu.memory_space<vmem>>, vector<32x32xf32>,
    return
  }
  func.func @transform_0(%arg0: i32) -> (i32, i32) {
    %c0_i32 = arith.constant 0 : i32
    %c0_i32_0 = arith.constant 0 : i32
    return %arg0, %c0_i32 : i32, i32
  }
  func.func @transform_1(%arg0: i32) -> (i32, i32) {
    %c0_i32 = arith.constant 0 : i32
    %c0_i32_0 = arith.constant 0 : i32
    %c0_i32_1 = arith.constant 0 : i32
    return %c0_i32, %c0_i32_0 : i32, i32
  }
  func.func @transform_2(%arg0: i32) -> (i32, i32) {
    %c0_i32 = arith.constant 0 : i32
    %c0_i32_0 = arith.constant 0 : i32
    %c0_i32_1 = arith.constant 0 : i32
    return %c0_i32, %c0_i32_0 : i32, i32
  }
  func.func @transform_3(%arg0: i32) -> (i32, i32) {
    %c0_i32 = arith.constant 0 : i32
    %c0_i32_0 = arith.constant 0 : i32
    return %arg0, %c0_i32 : i32, i32
  }
}

</mosaic_0001>

<bundles_post_ra>
// kernel: tpu_custom_call.1
= control target key start
LH: loop header
LB: loop body
LE: loop exit
PB: predicated region body
PF: predicated region fallthrough
CT: control target
= control target key end

     0   :  { %s298_s0 = inlined_call_operand.vmem [shape: f32[32,64], index: 0, kind: input, shape index: {}]   ;;  %s299_s1 = inlined_call_operand.vmem [shape: f32[64,32], index: 1, kind: input, shape index: {}]   ;;  %s300_s2 = inlined_call_operand.vmem [shape: f32[1,32], index: 2, kind: input, shape index: {}]   ;;  %s301_s3 = inlined_call_operand.hbm [shape: f32[32,32], index: 3, kind: output, shape index: {}]  }
   0x1   :  { %v26_v0 = vld [vmem:[%s299_s1 + $0x38] sm:$0xff]  ;;  %v25_v1 = vld [vmem:[%s299_s1 + $0x30] sm:$0xff]  ;;  %v24_v2 = vld [vmem:[%s299_s1 + $0x28] sm:$0xff] }
   0x2   :  { %170 = vmatprep.subr.mxu0 %v26_v0  ;;  %192 = vmatprep.subr.mxu1 %v26_v0  ;;  %v23_v3 = vld [vmem:[%s299_s1 + $0x20] sm:$0xff] }
   0x3   :  { %171 = vmatpush3.msra.mxu0 %v26_v0  ;;  %200 = vmatpush3.msra.mxu1 %v26_v0 }
   0x4   :  { %172 = vmatprep.subr.mxu0 %v25_v1  ;;  %193 = vmatprep.subr.mxu1 %v25_v1 }
   0x5   :  { %173 = vmatpush3.msra.mxu0 %v25_v1  ;;  %201 = vmatpush3.msra.mxu1 %v25_v1 }
   0x6   :  { %8 = vsyncpa [#allocation3], 0  ;;  %174 = vmatprep.subr.mxu0 %v24_v2  ;;  %194 = vmatprep.subr.mxu1 %v24_v2  ;;  %v22_v4 = vld [vmem:[%s299_s1 + $0x18] sm:$0xff]  ;;  %v21_v5 = vld [vmem:[%s299_s1 + $0x10] sm:$0xff]  ;;  %vm34_vm0 = vcmask 523264   ;;  %s233_s10 = smov [#allocation2]  }
   0x7   :  { %175 = vmatpush3.msra.mxu0 %v24_v2  ;;  %202 = vmatpush3.msra.mxu1 %v24_v2  ;;  %v20_v6 = vld [vmem:[%s299_s1 + $0x8] sm:$0xff]  ;;  %v19_v7 = vld [vmem:[%s299_s1] sm:$0xff]  ;;  %v17_v9 = vld [vmem:[%s298_s0 + $0x10] sm:$0xff]  ;;  %s142_s11 = sshll.u32 %s233_s10, 4  ;;  %vm132_vm1 = vcmask 261120   ;;  %s143_s11 = int_to_ptr.vmem [resolvable:$true] %s142_s11 }
   0x8   :  { %176 = vmatprep.subr.mxu0 %v23_v3  ;;  %195 = vmatprep.subr.mxu1 %v23_v3  ;;  %v15_v8 = vld [vmem:[%s298_s0] sm:$0xff]  ;;  %v16_v10 = vld [vmem:[%s298_s0 + $0x8] sm:$0xff]  ;;  %v18_v11 = vld [vmem:[%s298_s0 + $0x18] sm:$0xff]  ;;  %s211_s0 = scalar_lea.vmem %s143_s11, 512  ;;  %p216_p1 = scmp.lt.s32.totalorder %s143_s11, %s143_s11 }
   0x9   :  { %177 = vmatpush3.msra.mxu0 %v23_v3  ;;  %203 = vmatpush3.msra.mxu1 %v23_v3  ;;  %v153_v12 = vld [vmem:[%s300_s2] ss:$0 sm:$0xff]  ;;  %p212_p0 = scmp.ne.s32.totalorder %s143_s11, %s211_s0  ;;  %p217_p2 = scmp.lt.s32.totalorder %s211_s0, %s211_s0 }
   0xa   :  { %178 = vmatprep.subr.mxu0 %v22_v4  ;;  %196 = vmatprep.subr.mxu1 %v22_v4 }
   0xb   :  { %179 = vmatpush3.msra.mxu0 %v22_v4  ;;  %204 = vmatpush3.msra.mxu1 %v22_v4  ;;  %p218_p3 = por %p217_p2, %p216_p1 }
   0xc   :  { %180 = vmatprep.subr.mxu0 %v21_v5  ;;  %197 = vmatprep.subr.mxu1 %v21_v5 }
   0xd   :  { %181 = vmatpush3.msra.mxu0 %v21_v5  ;;  %205 = vmatpush3.msra.mxu1 %v21_v5  ;;  %p219_p4 = pnand %p218_p3, %p212_p0 }
   0xe   :  { %182 = vmatprep.subr.mxu0 %v20_v6  ;;  %198 = vmatprep.subr.mxu1 %v20_v6 }
   0xf   :  { %183 = vmatpush3.msra.mxu0 %v20_v6  ;;  %206 = vmatpush3.msra.mxu1 %v20_v6 }
  0x10   :  { %184 = vmatprep.subr.mxu0 %v19_v7  ;;  %199 = vmatprep.subr.mxu1 %v19_v7 }
  0x11   :  { %185 = vmatpush3.msra.mxu0 %v19_v7  ;;  %207 = vmatpush3.msra.mxu1 %v19_v7 }
  0x12   :  { %186 = vmatprep.mubr.msk.f32.mxu0 %vm34_vm0, %v15_v8  ;;  %189 = vmatprep.mubr.msk.f32.mxu1 %vm34_vm0, %v17_v9 }
  0x13   :  { %187 = vmatmul.mubr.msk.f32.vlgmr.msra.gmra.mxu0 %vm34_vm0, %v16_v10  ;;  %190 = vmatmul.mubr.msk.f32.vlgmr.msra.gmra.mxu1 %vm34_vm0, %v18_v11 }
  0xd3   :  { %v188_v13 = vpop.f32.mrf.mxu0  ;;  %v191_v14 = vpop.f32.mrf.mxu1 }
  0xd4   :  { %v119_v15 = vadd.f32 %v188_v13, %v153_v12  ;;  %v129_v16 = vadd.f32 %v191_v14, %v153_v12 }
  0xd5   :  { %v113_v17 = vpop.f32.mrf.mxu0  ;;  %v123_v18 = vpop.f32.mrf.mxu1 }
  0xd6   :  { %134 = vst.msk [vmem:[#allocation2 + $0x8] sm:$0xff] %vm132_vm1, %v119_v15  ;;  %136 = vst.msk [vmem:[#allocation2 + $0x18] sm:$0xff] %vm132_vm1, %v129_v16  ;;  %v114_v19 = vadd.f32 %v153_v12, %v113_v17  ;;  %v124_v20 = vadd.f32 %v153_v12, %v123_v18 }
  0xd8   :  { %133 = vst.msk [vmem:[#allocation2] sm:$0xff] %vm132_vm1, %v114_v19  ;;  %135 = vst.msk [vmem:[#allocation2 + $0x10] sm:$0xff] %vm132_vm1, %v124_v20 }
  0xd9   :  { %222 = shalt.err (!%p219_p4)
}
  0xda   :  { %s234_s2 = smov 128   ;;  %s235_s12 = smov 8  }
  0xdb   :  { %148 = dma.vmem_to_hbm [thread:$0]  %s143_s11, 512, %s301_s3, [#allocation3], %s234_s2, %s234_s2, %s235_s12  }
  0xdc   :  { %231 = dma.done.wait [#allocation3], 512  }
  0xdd   :  { %232 = vsyncadd [#allocation3], 4294966784 }
  0xde   :  { %152 = vsyncpa [#allocation3], 1 }

</bundles_post_ra>
